<compile_context>
chip_gen: v5e
topology: v5e:2x2
jax: 0.10.0
libtpu: 0.0.40
codegen_flags: <defaults>
</compile_context>

<pallas_src>
import jax
import jax.numpy as jnp
from jax.experimental import pallas as pl
from jax.experimental.pallas import tpu as pltpu


# ----------------------------------------------------------------------------
# Kernel 1: per-batch spatial sum of feat = ReLU(BN(conv1x1([fsp; fcp]))).
# Grid = (N, HW // TILE).  The (Cout, 1) sum output stays resident across the
# spatial ("arbitrary") axis and is accumulated.
# ----------------------------------------------------------------------------
def _feat_sum_kernel(xa_ref, xb_ref, w1a_ref, w1b_ref, s1_ref, b1_ref,
                     sum_ref):
    j = pl.program_id(1)

    y = jnp.dot(w1a_ref[...], xa_ref[...], preferred_element_type=jnp.float32)
    y = y + jnp.dot(w1b_ref[...], xb_ref[...],
                    preferred_element_type=jnp.float32)
    y = jnp.maximum(y * s1_ref[...] + b1_ref[...], 0.0)        # (Cout, T)

    @pl.when(j == 0)
    def _():
        sum_ref[...] = jnp.zeros_like(sum_ref)

    sum_ref[...] = sum_ref[...] + jnp.sum(y, axis=1, keepdims=True)  # (Cout,1)


# ----------------------------------------------------------------------------
# Kernel 2: recompute feat and apply the precomputed attention factor
# (atten + 1), i.e. out = feat * atten + feat.  Pure streaming, no state.
# ----------------------------------------------------------------------------
def _apply_kernel(xa_ref, xb_ref, w1a_ref, w1b_ref, s1_ref, b1_ref, fac_ref,
                  out_ref):
    y = jnp.dot(w1a_ref[...], xa_ref[...], preferred_element_type=jnp.float32)
    y = y + jnp.dot(w1b_ref[...], xb_ref[...],
                    preferred_element_type=jnp.float32)
    y = jnp.maximum(y * s1_ref[...] + b1_ref[...], 0.0)        # (Cout, T)
    out_ref[...] = (y * fac_ref[...]).astype(out_ref.dtype)    # lane-dense


# ----------------------------------------------------------------------------
# Tile selection: largest multiple-of-128 divisor of HW that fits the
# double-buffered VMEM budget (falls back to a full row only if HW has no
# multiple-of-128 divisor at all).
# ----------------------------------------------------------------------------
def _pick_tile_hw(hw, bytes_per_col, desired, vmem_budget=20 * 1024 * 1024):
    cap = max(128, vmem_budget // max(1, bytes_per_col))
    upper = min(hw, desired, cap)
    for t in range(upper - upper % 128, 0, -128):
        if hw % t == 0:
            return t
    # TODO(synk): pad HW to a multiple of 128 (with masked sums) instead of a
    # full-row block for awkward spatial sizes.
    return hw


# ----------------------------------------------------------------------------
# Wrapper
# ----------------------------------------------------------------------------
def ffm_forward(fsp, fcp, params, *, max_tile_hw=1024):
    """fsp, fcp: (N, Cin, H, W) float32 (NCHW, as in the PyTorch module)."""
    N, Cin, H, W = fsp.shape
    HW = H * W
    Cout = params["w1"].shape[1]

    # Free reshapes only -- no transpose, no concat.
    xa = fsp.reshape(N, Cin, HW)
    xb = fcp.reshape(N, Cin, HW)

    # Split + transpose the 1x1 conv weight: (2*Cin, Cout) -> two (Cout, Cin).
    w1a = params["w1"][:Cin].T
    w1b = params["w1"][Cin:].T
    s1 = params["s1"].reshape(Cout, 1)
    b1 = params["b1"].reshape(Cout, 1)

    # Per-lane-column bytes of the double-buffered streams (pass 2 is larger).
    bytes_per_col = (2 * Cin + Cout) * 4 * 2
    tile_hw = _pick_tile_hw(HW, bytes_per_col, max_tile_hw)
    n_tiles = HW // tile_hw

    vmem_limit = 32 * 1024 * 1024  # explicit; safe on v5e / v6e / v7x

    x_spec = pl.BlockSpec((pl.Squeezed(), Cin, tile_hw), lambda i, j: (i, 0, j))
    w_spec = pl.BlockSpec((Cout, Cin), lambda i, j: (0, 0))
    v_spec = pl.BlockSpec((Cout, 1), lambda i, j: (0, 0))

    # Pass 1: per-batch spatial sums of feat.
    sums = pl.pallas_call(
        _feat_sum_kernel,
        out_shape=jax.ShapeDtypeStruct((N, Cout, 1), jnp.float32),
        grid_spec=pltpu.PrefetchScalarGridSpec(
            num_scalar_prefetch=0,
            grid=(N, n_tiles),
            in_specs=[x_spec, x_spec, w_spec, w_spec, v_spec, v_spec],
            out_specs=pl.BlockSpec((pl.Squeezed(), Cout, 1),
                                   lambda i, j: (i, 0, 0)),
        ),
        compiler_params=pltpu.CompilerParams(
            dimension_semantics=("parallel", "arbitrary"),
            vmem_limit_bytes=vmem_limit),
    )(xa, xb, w1a, w1b, s1, b1)

    # Tiny attention head (N x Cout) in plain JAX: mean -> conv1x1 -> BN ->
    # sigmoid.  Pass (atten + 1) so the kernel does a single multiply.
    mean = sums[:, :, 0] * (1.0 / HW)                             # (N, Cout)
    atten = jax.nn.sigmoid(mean @ params["w2"] * params["s2"] + params["b2"])
    fac = (atten + 1.0).astype(jnp.float32).reshape(N, Cout, 1)

    # Pass 2: recompute feat and apply attention; both axes parallel.
    out = pl.pallas_call(
        _apply_kernel,
        out_shape=jax.ShapeDtypeStruct((N, Cout, HW), fsp.dtype),
        grid_spec=pltpu.PrefetchScalarGridSpec(
            num_scalar_prefetch=0,
            grid=(N, n_tiles),
            in_specs=[x_spec, x_spec, w_spec, w_spec, v_spec, v_spec,
                      pl.BlockSpec((pl.Squeezed(), Cout, 1),
                                   lambda i, j: (i, 0, 0))],
            out_specs=pl.BlockSpec((pl.Squeezed(), Cout, tile_hw),
                                   lambda i, j: (i, 0, j)),
        ),
        compiler_params=pltpu.CompilerParams(
            dimension_semantics=("parallel", "parallel"),
            vmem_limit_bytes=vmem_limit),
    )(xa, xb, w1a, w1b, s1, b1, fac)

    return out.reshape(N, Cout, H, W)                             # NCHW


# ----------------------------------------------------------------------------
# Deterministic parameter init (folds BN running stats / gamma / beta into a
# per-channel scale & bias -- eval-mode BN).
# ----------------------------------------------------------------------------
def init_params(key, in_chan, out_chan, eps=1e-5):
    C2 = 2 * in_chan
    ks = jax.random.split(key, 8)

    # convblk.conv: Conv2d(2*in_chan, out_chan, 1, bias=False)
    w1 = 0.1 * jax.random.normal(ks[0], (C2, out_chan), jnp.float32)
    gamma1 = 1.0 + 0.1 * jax.random.normal(ks[1], (out_chan,), jnp.float32)
    beta1 = 0.1 * jax.random.normal(ks[2], (out_chan,), jnp.float32)
    rm1 = 0.05 * jax.random.normal(ks[3], (out_chan,), jnp.float32)
    rv1 = 0.5 + jax.random.uniform(ks[4], (out_chan,), jnp.float32)

    # conv: Conv2d(out_chan, out_chan, 1, bias=False) + bn
    w2 = 0.1 * jax.random.normal(ks[5], (out_chan, out_chan), jnp.float32)
    gamma2 = 1.0 + 0.1 * jax.random.normal(ks[6], (out_chan,), jnp.float32)
    beta2 = 0.1 * jax.random.normal(ks[7], (out_chan,), jnp.float32)
    rm2 = jnp.zeros((out_chan,), jnp.float32)
    rv2 = jnp.ones((out_chan,), jnp.float32)

    s1 = gamma1 / jnp.sqrt(rv1 + eps)
    b1 = beta1 - rm1 * s1
    s2 = gamma2 / jnp.sqrt(rv2 + eps)
    b2 = beta2 - rm2 * s2
    return {"w1": w1, "s1": s1, "b1": b1, "w2": w2, "s2": s2, "b2": b2}


# Pure-JAX reference (same folded-BN math) for correctness check.
def ffm_reference(fsp, fcp, params):
    fcat = jnp.concatenate([fsp, fcp], axis=1)
    x = jnp.transpose(fcat, (0, 2, 3, 1))                        # NHWC
    feat = jnp.maximum(x @ params["w1"] * params["s1"] + params["b1"], 0.0)
    atten = jnp.mean(feat, axis=(1, 2), keepdims=True)
    atten = atten @ params["w2"] * params["s2"] + params["b2"]
    atten = jax.nn.sigmoid(atten)
    out = feat * atten + feat
    return jnp.transpose(out, (0, 3, 1, 2))                      # NCHW


if __name__ == "__main__":
    key = jax.random.PRNGKey(0)
    N, Cin, Cout, H, W = 2, 4, 8, 16, 16

    k0, k1, k2 = jax.random.split(key, 3)
    fsp = jax.random.normal(k0, (N, Cin, H, W), jnp.float32)
    fcp = jax.random.normal(k1, (N, Cin, H, W), jnp.float32)
    params = init_params(k2, Cin, Cout)

    out = jax.block_until_ready(ffm_forward(fsp, fcp, params))
    ref = ffm_reference(fsp, fcp, params)

    assert out.shape == (N, Cout, H, W), out.shape
    assert jnp.allclose(out, ref, atol=2e-4, rtol=2e-4), float(
        jnp.max(jnp.abs(out - ref)))
    print("KERNEL_OK")
</pallas_src>

<mosaic_0001>
module attributes {stable_mosaic.version = 11 : i64} {
  func.func @_feat_sum_kernel(%arg0: i32, %arg1: i32, %arg2: memref<1x4x256xf32, #tpu.memory_space<vmem>>, %arg3: memref<1x4x256xf32, #tpu.memory_space<vmem>>, %arg4: memref<8x4xf32, #tpu.memory_space<vmem>>, %arg5: memref<8x4xf32, #tpu.memory_space<vmem>>, %arg6: memref<8x1xf32, #tpu.memory_space<vmem>>, %arg7: memref<8x1xf32, #tpu.memory_space<vmem>>, %arg8: memref<1x8x1xf32, #tpu.memory_space<vmem>>) attributes {dimension_semantics = [#tpu.dimension_semantics<parallel>, #tpu.dimension_semantics<arbitrary>], iteration_bounds = array<i64: 2, 1>, scalar_prefetch = 0 : i64, scratch_operands = 0 : i64, tpu.core_type = #tpu.core_type<tc>, window_params = [{transform_indices = @transform_0, window_bounds = array<i64: 1, 4, 256>}, {transform_indices = @transform_1, window_bounds = array<i64: 1, 4, 256>}, {pipeline_mode = #tpu.pipeline_mode<synchronous>, transform_indices = @transform_2, window_bounds = array<i64: 8, 4>}, {pipeline_mode = #tpu.pipeline_mode<synchronous>, transform_indices = @transform_3, window_bounds = array<i64: 8, 4>}, {pipeline_mode = #tpu.pipeline_mode<synchronous>, transform_indices = @transform_4, window_bounds = array<i64: 8, 1>}, {pipeline_mode = #tpu.pipeline_mode<synchronous>, transform_indices = @transform_5, window_bounds = array<i64: 8, 1>}, {transform_indices = @transform_6, window_bounds = array<i64: 1, 8, 1>}]} {
    %c0 = arith.constant 0 : index
    %c0_0 = arith.constant 0 : index
    %0 = vector.load %arg4[%c0, %c0_0] : memref<8x4xf32, #tpu.memory_space<vmem>>, vector<8x4xf32>
    %c0_1 = arith.constant 0 : index
    %c0_2 = arith.constant 0 : index
    %c0_3 = arith.constant 0 : index
    %1 = vector.load %arg2[%c0_1, %c0_2, %c0_3] : memref<1x4x256xf32, #tpu.memory_space<vmem>>, vector<1x4x256xf32>
    %2 = vector.shape_cast %1 : vector<1x4x256xf32> to vector<4x256xf32>
    %cst = arith.constant dense<0.000000e+00> : vector<8x256xf32>
    %3 = tpu.matmul %0, %2, %cst {dimension_numbers = #tpu.dot_dimension_numbers<[1], [0], [0], [1], [0, 0, 1, 1], [], []>} : vector<8x4xf32>, vector<4x256xf32>, vector<8x256xf32> -> vector<8x256xf32>
    %c0_4 = arith.constant 0 : index
    %c0_5 = arith.constant 0 : index
    %4 = vector.load %arg5[%c0_4, %c0_5] : memref<8x4xf32, #tpu.memory_space<vmem>>, vector<8x4xf32>
    %c0_6 = arith.constant 0 : index
    %c0_7 = arith.constant 0 : index
    %c0_8 = arith.constant 0 : index
    %5 = vector.load %arg3[%c0_6, %c0_7, %c0_8] : memref<1x4x256xf32, #tpu.memory_space<vmem>>, vector<1x4x256xf32>
    %6 = vector.shape_cast %5 : vector<1x4x256xf32> to vector<4x256xf32>
    %cst_9 = arith.constant dense<0.000000e+00> : vector<8x256xf32>
    %7 = tpu.matmul %4, %6, %cst_9 {dimension_numbers = #tpu.dot_dimension_numbers<[1], [0], [0], [1], [0, 0, 1, 1], [], []>} : vector<8x4xf32>, vector<4x256xf32>, vector<8x256xf32> -> vector<8x256xf32>
    %8 = arith.addf %3, %7 : vector<8x256xf32>
    %c0_10 = arith.constant 0 : index
    %c0_11 = arith.constant 0 : index
    %9 = vector.load %arg6[%c0_10, %c0_11] : memref<8x1xf32, #tpu.memory_space<vmem>>, vector<8x1xf32>
    %10 = vector.broadcast %9 : vector<8x1xf32> to vector<8x256xf32>
    %11 = arith.mulf %8, %10 : vector<8x256xf32>
    %c0_12 = arith.constant 0 : index
    %c0_13 = arith.constant 0 : index
    %12 = vector.load %arg7[%c0_12, %c0_13] : memref<8x1xf32, #tpu.memory_space<vmem>>, vector<8x1xf32>
    %13 = vector.broadcast %12 : vector<8x1xf32> to vector<8x256xf32>
    %14 = arith.addf %11, %13 : vector<8x256xf32>
    %cst_14 = arith.constant 0.000000e+00 : f32
    %15 = vector.broadcast %cst_14 : f32 to vector<8x256xf32>
    %16 = arith.maximumf %14, %15 : vector<8x256xf32>
    %c0_i32 = arith.constant 0 : i32
    %17 = arith.cmpi eq, %arg1, %c0_i32 : i32
    %18 = arith.extui %17 : i1 to i32
    %c0_i32_15 = arith.constant 0 : i32
    %19 = arith.cmpi ne, %18, %c0_i32_15 : i32
    scf.if %19 {
      %cst_23 = arith.constant 0.000000e+00 : f32
      %28 = vector.broadcast %cst_23 : f32 to vector<8x1xf32>
      %c0_24 = arith.constant 0 : index
      %c0_25 = arith.constant 0 : index
      %c0_26 = arith.constant 0 : index
      %29 = vector.load %arg8[%c0_24, %c0_25, %c0_26] : memref<1x8x1xf32, #tpu.memory_space<vmem>>, vector<1x8x1xf32>
      %30 = vector.shape_cast %29 : vector<1x8x1xf32> to vector<8x1xf32>
      %31 = vector.shape_cast %28 : vector<8x1xf32> to vector<1x8x1xf32>
      tpu.vector_store %arg8[%c0_24, %c0_25, %c0_26], %31 {strides = array<i32>} : memref<1x8x1xf32, #tpu.memory_space<vmem>>, vector<1x8x1xf32>,
    } else {
    }
    %c0_16 = arith.constant 0 : index
    %c0_17 = arith.constant 0 : index
    %c0_18 = arith.constant 0 : index
    %20 = vector.load %arg8[%c0_16, %c0_17, %c0_18] : memref<1x8x1xf32, #tpu.memory_space<vmem>>, vector<1x8x1xf32>
    %21 = vector.shape_cast %20 : vector<1x8x1xf32> to vector<8x1xf32>
    %cst_19 = arith.constant dense<0.000000e+00> : vector<8xf32>
    %22 = vector.multi_reduction <add>, %16, %cst_19 [1] : vector<8x256xf32> to vector<8xf32>
    %23 = vector.shape_cast %22 : vector<8xf32> to vector<8x1xf32>
    %24 = arith.addf %21, %23 : vector<8x1xf32>
    %c0_20 = arith.constant 0 : index
    %c0_21 = arith.constant 0 : index
    %c0_22 = arith.constant 0 : index
    %25 = vector.load %arg8[%c0_20, %c0_21, %c0_22] : memref<1x8x1xf32, #tpu.memory_space<vmem>>, vector<1x8x1xf32>
    %26 = vector.shape_cast %25 : vector<1x8x1xf32> to vector<8x1xf32>
    %27 = vector.shape_cast %24 : vector<8x1xf32> to vector<1x8x1xf32>
    tpu.vector_store %arg8[%c0_20, %c0_21, %c0_22], %27 {strides = array<i32>} : memref<1x8x1xf32, #tpu.memory_space<vmem>>, vector<1x8x1xf32>,
    return
  }
  func.func @transform_0(%arg0: i32, %arg1: i32) -> (i32, i32, i32) {
    %c0_i32 = arith.constant 0 : i32
    %c0_i32_0 = arith.constant 0 : i32
    return %arg0, %c0_i32, %arg1 : i32, i32, i32
  }
  func.func @transform_1(%arg0: i32, %arg1: i32) -> (i32, i32, i32) {
    %c0_i32 = arith.constant 0 : i32
    %c0_i32_0 = arith.constant 0 : i32
    return %arg0, %c0_i32, %arg1 : i32, i32, i32
  }
  func.func @transform_2(%arg0: i32, %arg1: i32) -> (i32, i32) {
    %c0_i32 = arith.constant 0 : i32
    %c0_i32_0 = arith.constant 0 : i32
    %c0_i32_1 = arith.constant 0 : i32
    return %c0_i32, %c0_i32_0 : i32, i32
  }
  func.func @transform_3(%arg0: i32, %arg1: i32) -> (i32, i32) {
    %c0_i32 = arith.constant 0 : i32
    %c0_i32_0 = arith.constant 0 : i32
    %c0_i32_1 = arith.constant 0 : i32
    return %c0_i32, %c0_i32_0 : i32, i32
  }
  func.func @transform_4(%arg0: i32, %arg1: i32) -> (i32, i32) {
    %c0_i32 = arith.constant 0 : i32
    %c0_i32_0 = arith.constant 0 : i32
    %c0_i32_1 = arith.constant 0 : i32
    return %c0_i32, %c0_i32_0 : i32, i32
  }
  func.func @transform_5(%arg0: i32, %arg1: i32) -> (i32, i32) {
    %c0_i32 = arith.constant 0 : i32
    %c0_i32_0 = arith.constant 0 : i32
    %c0_i32_1 = arith.constant 0 : i32
    return %c0_i32, %c0_i32_0 : i32, i32
  }
  func.func @transform_6(%arg0: i32, %arg1: i32) -> (i32, i32, i32) {
    %c0_i32 = arith.constant 0 : i32
    %c0_i32_0 = arith.constant 0 : i32
    %c0_i32_1 = arith.constant 0 : i32
    return %arg0, %c0_i32, %c0_i32_0 : i32, i32, i32
  }
}

</mosaic_0001>

<bundles_post_ra>
// kernel: tpu_custom_call.1
= control target key start
LH: loop header
LB: loop body
LE: loop exit
PB: predicated region body
PF: predicated region fallthrough
CT: control target
= control target key end

     0   :  { %11 = vsyncpa [#allocation3], 0  ;;  %s866_s0 = inlined_call_operand.vmem [shape: f32[2,4,256], index: 0, kind: input, shape index: {}]   ;;  %s867_s1 = inlined_call_operand.hbm [shape: f32[2,4,256], index: 1, kind: input, shape index: {}]   ;;  %s868_s2 = inlined_call_operand.vmem [shape: f32[8,4], index: 2, kind: input, shape index: {}]   ;;  %s869_s3 = inlined_call_operand.vmem [shape: f32[8,4], index: 3, kind: input, shape index: {}]   ;;  %s870_s4 = inlined_call_operand.vmem [shape: f32[8,1], index: 4, kind: input, shape index: {}]   ;;  %s871_s5 = inlined_call_operand.vmem [shape: f32[8,1], index: 5, kind: input, shape index: {}]   ;;  %s872_s6 = inlined_call_operand.vmem [shape: f32[2,8,1], index: 6, kind: output, shape index: {}]  }
   0x1   :  { %13 = vsyncpa [#allocation3 + $0x1], 0  ;;  %s757_s21 = smov 0   ;;  %s759_s22 = smov 0  }
   0x2   :  { %s761_s23 = smov 0   ;;  %s763_s24 = smov 0  }
   0x3   :  { %s765_s25 = smov 0   ;;  %s767_s26 = smov 0  }
   0x4 LB: > { %s556_s27 = sadd.s32 4294967295, %s718_s26   ;;  %s31_s28 = sadd.s32 1, %s714_s25  ;;  %s718_s26 = sphi %s767_s26, %s19_s26   ;;  %s714_s25 = sphi %s765_s25, %s879_s25   ;;  %s710_s24 = sphi %s763_s24, %s878_s24   ;;  %s706_s23 = sphi %s761_s23, %s877_s23   ;;  %s702_s22 = sphi %s759_s22, %s876_s22   ;;  %s698_s21 = sphi %s757_s21, %s875_s21  }
   0x5   : > { %p33_p0 = scmp.ge.s32.totalorder %s31_s28, 2  ;;  %s68_s29 = sadd.s32 1, %s706_s23 }
   0x6   : > { %p75_p1 = scmp.ne.s32.totalorder %s706_s23, %s702_s22  ;;  %p76_p2 = scmp.eq.s32.totalorder %s718_s26, 0 }
   0x7   : > { %s881_s28 = smov (%p33_p0, %s31_s28), 0  ;;  %p81_p4 = scmp.ne.s32.totalorder %s702_s22, %s698_s21 }
   0x8   : > { %p793_p3 = por %p76_p2, %p75_p1  ;;  %s63_s7 = ssub.s32 %s714_s25, %s881_s28 }
   0x9   : > { %p82_p5 = scmp.eq.s32.totalorder %s556_s27, 0  ;;  %p66_p6 = scmp.eq.s32.totalorder %s63_s7, 0 }
   0xa   : > { %p586_p8 = scmp.lt.s32.totalorder %s718_s26, 2  ;;  %s240_s10 = sand.u32 1, %s706_s23  }
   0xb   : > { %p800_p7 = por %p82_p5, %p81_p4  ;;  %s578_s11 = sshll.u32 %s714_s25, 3 }
   0xc   : > { %s806_s9 = scalar_select %p66_p6, %s706_s23, %s68_s29  }
   0xd   : > { %s560_s12 = sshll.u32 %s240_s10, 3  ;;  %s251_s15 = scalar_lea.hbm %s867_s1, %s578_s11 }
   0xe   : > { %s253_s16 = sshll.u32 %s251_s15, 4  ;;  %s244_s17 = scalar_lea.vmem [#allocation2], %s560_s12  ;;  %s254_s16 = int_to_ptr.hbm [resolvable:$true] %s253_s16 }
   0xf   : > { %s255_s18 = sshll.u32 %s244_s17, 4  ;;  %p583_p9 = pnand %p586_p8, %p793_p3  ;;  %s256_s18 = int_to_ptr.vmem [resolvable:$true] %s255_s18 }
  0x10   : > { %p563_p10 = scmp.ge.s32.totalorder %s718_s26, 1  ;;  %p260_p11 = scmp.lt.s32.totalorder %s718_s26, 3 }
  0x11   : > { %s241_s19 = scalar_lea.sflag [#allocation3], %s240_s10 }
  0x12   : > { %585 = dma.hbm_to_vmem [thread:$0]  (!%p583_p9), %s254_s16, 128, %s256_s18, %s241_s19  }
  0x13   : > { %p261_p12 = pnand %p563_p10, %p260_p11 }
  0x14   : > { %s266_s20 = sand.u32 (!%p261_p12), 1, %s702_s22  }
  0x15   : > { %264 = sbr.rel (%p261_p12) target bundleno = 306 (0x132), region = 44  ;;  %s564_s21 = sshll.u32 (!%p261_p12), %s266_s20, 3 }
  0x16   : > { %s267_s27 = scalar_lea.sflag (!%p261_p12), [#allocation3], %s266_s20  ;;  %s270_s29 = scalar_lea.vmem (!%p261_p12), [#allocation2], %s564_s21 }
  0x1a   : > { %693 = dma.done.wait (%p800_p7), %s267_s27, 128  }
  0x1b   : > { %695 = vsyncadd (%p800_p7), %s267_s27, 4294967168  ;;  %p309_p13 = scmp.lt.s32.totalorder %s710_s24, 1  ;;  %v720_v0 = vmov 0   ;;  %v326_v1 = vld [vmem:[%s270_s29] sm:$0xff]  ;;  %v431_v2 = vld [vmem:[%s870_s4] sm:$0xff]  ;;  %vm335_vm0 = vcmask 1043456  }
  0x1c   : > { %637 = vset.pattern.permute.xlu0 %v720_v0  ;;  %328 = vst [vmem:[#allocation1] ss:$2 sm:$0xff] %v326_v1  ;;  %v325_v4 = vld [vmem:[%s869_s3] sm:$0xff]  ;;  %vm331_vm1 = vcmask 31744   ;;  %vm453_vm2 = vcmask 7168   ;;  %v721_v11 = vmov 0.0  }
  0x1d   : > { %s883_s24 = smov (!%p309_p13, %s710_s24), 1  ;;  %434 = vperm.xlu0 %637, %v431_v2   ;;  %v439_v5 = vld [vmem:[%s871_s5] sm:$0xff] }
  0x1e   : > { %s579_s30 = sshll.u32 %s883_s24, 3  ;;  %v323_v8 = vld [vmem:[%s868_s2] sm:$0xff] }
  0x1f   : > { %s316_s13 = scalar_lea.vmem %s866_s0, %s579_s30  ;;  %s322_s20 = scalar_lea.vmem %s872_s6, %s579_s30 }
  0x20   : > { %v324_v3 = vld [vmem:[%s316_s13] sm:$0xff]  ;;  %454 = vst.msk [vmem:[%s322_s20] sm:$0xff] %vm453_vm2, %v721_v11 }
  0x23   : > { %v329_v6 = vld.sshfl [vmem:[#allocation1] sm:$0xff pattern:$0x75316420]  ;;  %v330_v7 = vld.sshfl [vmem:[#allocation1 + $0x8] sm:$0xff pattern:$0x75316420] }
  0x24   : > { %381 = vst [vmem:[#allocation1] ss:$2 sm:$0xff] %v324_v3  ;;  %568 = vmatpush.msk.msra.mxu0 %vm335_vm0, %v329_v6  ;;  %570 = vmatpush.msk.msra.mxu1 %vm335_vm0, %v330_v7 }
  0x25   : > { %569 = vmatmul.msk.f32.vlgmr.msra.gmra.mxu0 %vm331_vm1, %v325_v4  ;;  %571 = vmatmul.msk.f32.vlgmr.msra.gmra.mxu1 %vm331_vm1, %v325_v4 }
  0x26   : > { %442 = vperm.xlu0 %637, %v439_v5  }
  0x27   : > { %v455_v27 = vld [vmem:[%s322_s20] sm:$0xff] }
  0x2b   : > { %v382_v9 = vld.sshfl [vmem:[#allocation1] sm:$0xff pattern:$0x75316420]  ;;  %v383_v10 = vld.sshfl [vmem:[#allocation1 + $0x8] sm:$0xff pattern:$0x75316420] }
  0x2c   : > { %572 = vmatpush.msk.msra.mxu2 %vm335_vm0, %v382_v9  ;;  %574 = vmatpush.msk.msra.mxu3 %vm335_vm0, %v383_v10 }
  0x2d   : > { %573 = vmatmul.msk.f32.vlgmr.msra.gmra.mxu2 %vm331_vm1, %v323_v8  ;;  %575 = vmatmul.msk.f32.vlgmr.msra.gmra.mxu3 %vm331_vm1, %v323_v8 }
  0x8f   : > { %v435_v12 = vpop.permute.xlu0 %434 }
  0x98   : > { %v443_v21 = vpop.permute.xlu0 %442 }
  0xa2   : > { %v357_v13 = vpop.f32.mrf.mxu0  ;;  %v377_v14 = vpop.f32.mrf.mxu1 }
  0xb0   : > { %v408_v15 = vpop.f32.mrf.mxu2  ;;  %v428_v16 = vpop.f32.mrf.mxu3 }
  0xb1   : > { %v409_v17 = vadd.f32 %v408_v15, %v357_v13  ;;  %v429_v18 = vadd.f32 %v428_v16, %v377_v14 }
  0xb3   : > { %v437_v19 = vmul.f32 %v435_v12, %v409_v17  ;;  %v438_v20 = vmul.f32 %v435_v12, %v429_v18 }
  0xb5   : > { %v445_v22 = vadd.f32 %v443_v21, %v437_v19  ;;  %v446_v23 = vadd.f32 %v443_v21, %v438_v20 }
  0xb7   : > { %v447_v24 = vmax.f32 %v445_v22, 0.0  ;;  %v448_v25 = vmax.f32 %v446_v23, 0.0 }
  0xb9   : > { %v456_v26 = vadd.f32 %v448_v25, %v447_v24 }
  0xbb   : > { %457 = vadd.xlane.f32.xlu1 %v456_v26 }
 0x12e   : > { %v458_v28 = vpop.xlane.xlu1 %457 }
 0x12f   : > { %v459_v29 = vadd.f32 %v458_v28, %v455_v27 }
 0x131   : > { %461 = vst.msk [vmem:[%s322_s20] sm:$0xff] %vm453_vm2, %v459_v29 }
 0x132 PF: > { %s19_s26 = sadd.s32 1, %s718_s26   ;;  %s875_s21 = smov %s702_s22 }
 0x133   : > { %p16_p0 = scmp.ge.s32.totalorder %s19_s26, 4   ;;  %s876_s22 = smov %s706_s23 }
 0x134   : > { %s877_s23 = smov %s806_s9  ;;  %s878_s24 = smov %s714_s25 }
 0x135   : > { %s879_s25 = smov %s881_s28  ;;  %18 = sbr.rel (!%p16_p0) target bundleno = 4 (0x4), region = 91 }
 0x13a   :  { %481 = vsyncpa [#allocation3], 1 }
 0x13b   :  { %483 = vsyncpa [#allocation3 + $0x1], 1 }

</bundles_post_ra>
